<compile_context>
chip_gen: v5e
topology: v5e:2x2
jax: 0.10.0
libtpu: 0.0.40
codegen_flags: <defaults>
</compile_context>

<pallas_src>
import math

import numpy as np
import jax
import jax.numpy as jnp
from jax.experimental import pallas as pl


# ---------------------------------------------------------------------------
# Problem sizes (small, consistent with the module)
# ---------------------------------------------------------------------------
S = 8          # sequence length
B = 2          # batch
E = 32         # d_model
H = 4          # nhead
HD = E // H    # head dim
FF = 64        # dim_feedforward
R = S * B      # flattened rows (seq-major, batch-minor)
LN_EPS = 1e-5

# ---------------------------------------------------------------------------
# Packed parameter slab layout: one (SLAB_ROWS, 128) f32 array.
# ---------------------------------------------------------------------------
SLAB_LANES = 128
ROW_WQKV = 0            # (2E, 3E) block-diagonal [[wqk, 0], [0, wv]]
ROW_W1 = 64             # (E, FF)
ROW_W2 = 96             # (FF, E)
ROW_WO = 160            # (E, E)
VROW_BQKV = 192         # (1, 3E)  [bq*scale, bk, bv]
VROW_B1 = 193           # (1, FF)
VROW_BO = 194           # (1, E)
VROW_B2 = 195           # (1, E)
VROW_G1 = 196           # (1, E)
VROW_BE1 = 197          # (1, E)
VROW_G2 = 198           # (1, E)
VROW_BE2 = 199          # (1, E)
SLAB_ROWS = 200


def _layer_norm(x, gamma, beta):
    # var = E[x^2] - mu^2: the two cross-lane reductions are independent.
    mu = jnp.mean(x, axis=-1, keepdims=True)
    ms = jnp.mean(x * x, axis=-1, keepdims=True)
    var = ms - mu * mu
    return (x - mu) * jax.lax.rsqrt(var + LN_EPS) * gamma + beta


# ---------------------------------------------------------------------------
# Pallas kernel: full encoder layer, single invocation (grid = ())
# ---------------------------------------------------------------------------
def encoder_layer_kernel(x_ref, vin_ref, slab_ref, out_ref):
    x = x_ref[...]          # (R, E)  rows = (seq, batch) flattened, q = k = src
    vin = vin_ref[...]      # (R, E)  v = raw_src

    # Cross-batch mask built in-kernel (row = s*B + b after the flatten).
    rows = jax.lax.broadcasted_iota(jnp.int32, (R, R), 0)
    cols = jax.lax.broadcasted_iota(jnp.int32, (R, R), 1)
    same_batch = (rows % B) == (cols % B)

    # Fused q/k/v in-projection: one (R,2E)@(2E,3E) MXU pass against the
    # host-built block-diagonal weight; scale already folded into q columns.
    xv = jnp.concatenate([x, vin], axis=1)                                   # (R, 2E)
    qkv = jnp.dot(xv, slab_ref[ROW_WQKV:ROW_WQKV + 2 * E, 0:3 * E],
                  preferred_element_type=jnp.float32)
    qkv = qkv + slab_ref[VROW_BQKV:VROW_BQKV + 1, 0:3 * E]                   # (R, 3E)

    pvs = []
    for h in range(H):      # static unroll; each iteration covers BOTH batch elements
        lo, hi = h * HD, (h + 1) * HD
        qh = qkv[:, lo:hi]                  # (R, HD), pre-scaled
        kh = qkv[:, E + lo:E + hi]          # (R, HD)
        vh = qkv[:, 2 * E + lo:2 * E + hi]  # (R, HD)

        # q @ k^T without materializing a transpose.
        s = jax.lax.dot_general(qh, kh,
                                dimension_numbers=(((1,), (1,)), ((), ())),
                                preferred_element_type=jnp.float32)          # (R, R)
        s = jnp.where(same_batch, s, -1e30)                                  # block-diag over batch
        s = s - jnp.max(s, axis=-1, keepdims=True)
        p = jnp.exp(s)
        p = p * pl.reciprocal(jnp.sum(p, axis=-1, keepdims=True), approx=True)

        pvs.append(jnp.dot(p, vh, preferred_element_type=jnp.float32))       # (R, HD)

    # Fold the head-concatenate into ONE output projection matmul.
    pv_all = jnp.concatenate(pvs, axis=1)                                    # (R, E)
    attn = jnp.dot(pv_all, slab_ref[ROW_WO:ROW_WO + E, 0:E],
                   preferred_element_type=jnp.float32)
    attn = attn + slab_ref[VROW_BO:VROW_BO + 1, 0:E]

    # residual + norm1 (dropout1 identity in eval)
    x1 = _layer_norm(x + attn,
                     slab_ref[VROW_G1:VROW_G1 + 1, 0:E],
                     slab_ref[VROW_BE1:VROW_BE1 + 1, 0:E])

    # feed-forward (dropout identity in eval)
    hdn = jnp.dot(x1, slab_ref[ROW_W1:ROW_W1 + E, 0:FF],
                  preferred_element_type=jnp.float32)
    hdn = hdn + slab_ref[VROW_B1:VROW_B1 + 1, 0:FF]
    hdn = jnp.maximum(hdn, 0.0)
    ffn = jnp.dot(hdn, slab_ref[ROW_W2:ROW_W2 + FF, 0:E],
                  preferred_element_type=jnp.float32)
    ffn = ffn + slab_ref[VROW_B2:VROW_B2 + 1, 0:E]

    # residual + norm2 (dropout2 identity in eval)
    out_ref[...] = _layer_norm(x1 + ffn,
                               slab_ref[VROW_G2:VROW_G2 + 1, 0:E],
                               slab_ref[VROW_BE2:VROW_BE2 + 1, 0:E])
    # TODO(synk): attn_mask / key_padding_mask paths not implemented (None case only).


# ---------------------------------------------------------------------------
# Wrapper: no transposes; only contiguous (bitcast-level) reshapes.
# ---------------------------------------------------------------------------
@jax.jit
def encoder_layer(src, raw_src, slab):
    """src, raw_src: (S, B, E) float32 (PyTorch layout). Returns (S, B, E)."""
    x2 = src.reshape(R, E)        # contiguous flatten: (s, b) -> row s*B + b
    v2 = raw_src.reshape(R, E)

    out2d = pl.pallas_call(
        encoder_layer_kernel,
        out_shape=jax.ShapeDtypeStruct((R, E), jnp.float32),
        # no grid / specs: single invocation, all operands whole-array in VMEM
    )(x2, v2, slab)

    return out2d.reshape(S, B, E)


# ---------------------------------------------------------------------------
# One-time parameter preparation: transpose weights to (in, out), fuse q/k/v
# into a block-diagonal slab, fold the 1/sqrt(HD) attention scale, and pack
# EVERYTHING into a single lane-padded (SLAB_ROWS, 128) array (one DMA).
# ---------------------------------------------------------------------------
def prepare_params(p):
    scale = 1.0 / math.sqrt(HD)
    n = {k: np.asarray(v, dtype=np.float32) for k, v in p.items()}

    slab = np.zeros((SLAB_ROWS, SLAB_LANES), np.float32)
    # Block-diagonal qkv weight: rows 0:E act on x (q,k), rows E:2E act on v-input.
    slab[ROW_WQKV:ROW_WQKV + E, 0:E] = n["wq"].T * scale
    slab[ROW_WQKV:ROW_WQKV + E, E:2 * E] = n["wk"].T
    slab[ROW_WQKV + E:ROW_WQKV + 2 * E, 2 * E:3 * E] = n["wv"].T
    slab[ROW_W1:ROW_W1 + E, 0:FF] = n["w1"].T
    slab[ROW_W2:ROW_W2 + FF, 0:E] = n["w2"].T
    slab[ROW_WO:ROW_WO + E, 0:E] = n["wo"].T
    slab[VROW_BQKV, 0:E] = n["bq"] * scale
    slab[VROW_BQKV, E:2 * E] = n["bk"]
    slab[VROW_BQKV, 2 * E:3 * E] = n["bv"]
    slab[VROW_B1, 0:FF] = n["b1"]
    slab[VROW_BO, 0:E] = n["bo"]
    slab[VROW_B2, 0:E] = n["b2"]
    slab[VROW_G1, 0:E] = n["g1"]
    slab[VROW_BE1, 0:E] = n["be1"]
    slab[VROW_G2, 0:E] = n["g2"]
    slab[VROW_BE2, 0:E] = n["be2"]
    return jnp.asarray(slab)


# ---------------------------------------------------------------------------
# Pure-JAX reference (independent formulation, PyTorch-layout params)
# ---------------------------------------------------------------------------
def encoder_layer_ref(src, raw_src, p):
    x = jnp.transpose(src, (1, 0, 2))        # (B, S, E)
    vi = jnp.transpose(raw_src, (1, 0, 2))
    q = x @ p["wq"].T + p["bq"]
    k = x @ p["wk"].T + p["bk"]
    v = vi @ p["wv"].T + p["bv"]
    qh = q.reshape(B, S, H, HD).transpose(0, 2, 1, 3) / math.sqrt(HD)
    kh = k.reshape(B, S, H, HD).transpose(0, 2, 1, 3)
    vh = v.reshape(B, S, H, HD).transpose(0, 2, 1, 3)
    s = jnp.einsum("bhqd,bhkd->bhqk", qh, kh)
    a = jax.nn.softmax(s, axis=-1)
    o = jnp.einsum("bhqk,bhkd->bhqd", a, vh).transpose(0, 2, 1, 3).reshape(B, S, E)
    o = o @ p["wo"].T + p["bo"]

    def ln(y, g, b):
        mu = jnp.mean(y, axis=-1, keepdims=True)
        var = jnp.mean((y - mu) ** 2, axis=-1, keepdims=True)
        return (y - mu) * jax.lax.rsqrt(var + LN_EPS) * g + b

    x1 = ln(x + o, p["g1"], p["be1"])
    f = jnp.maximum(x1 @ p["w1"].T + p["b1"], 0.0) @ p["w2"].T + p["b2"]
    x2 = ln(x1 + f, p["g2"], p["be2"])
    return jnp.transpose(x2, (1, 0, 2))


# ---------------------------------------------------------------------------
# Deterministic PyTorch-convention parameter init (weights are (out, in)).
# ---------------------------------------------------------------------------
def init_params(key):
    ks = jax.random.split(key, 16)
    return {
        "wq": jax.random.normal(ks[0], (E, E), jnp.float32) * 0.05,
        "wk": jax.random.normal(ks[1], (E, E), jnp.float32) * 0.05,
        "wv": jax.random.normal(ks[2], (E, E), jnp.float32) * 0.05,
        "wo": jax.random.normal(ks[3], (E, E), jnp.float32) * 0.05,
        "bq": jax.random.normal(ks[4], (E,), jnp.float32) * 0.01,
        "bk": jax.random.normal(ks[5], (E,), jnp.float32) * 0.01,
        "bv": jax.random.normal(ks[6], (E,), jnp.float32) * 0.01,
        "bo": jax.random.normal(ks[7], (E,), jnp.float32) * 0.01,
        "g1": 1.0 + jax.random.normal(ks[8], (E,), jnp.float32) * 0.02,
        "be1": jax.random.normal(ks[9], (E,), jnp.float32) * 0.02,
        "w1": jax.random.normal(ks[10], (FF, E), jnp.float32) * 0.05,
        "b1": jax.random.normal(ks[11], (FF,), jnp.float32) * 0.01,
        "w2": jax.random.normal(ks[12], (E, FF), jnp.float32) * 0.05,
        "b2": jax.random.normal(ks[13], (E,), jnp.float32) * 0.01,
        "g2": 1.0 + jax.random.normal(ks[14], (E,), jnp.float32) * 0.02,
        "be2": jax.random.normal(ks[15], (E,), jnp.float32) * 0.02,
    }


if __name__ == "__main__":
    key = jax.random.PRNGKey(0)
    k_src, k_raw, k_par = jax.random.split(key, 3)
    src = jax.random.normal(k_src, (S, B, E), jnp.float32)
    raw_src = jax.random.normal(k_raw, (S, B, E), jnp.float32)

    params = init_params(k_par)
    slab = prepare_params(params)   # one-time transpose / fuse / scale-fold / pack

    out = encoder_layer(src, raw_src, slab)
    out = jax.block_until_ready(out)

    ref = encoder_layer_ref(src, raw_src, params)
    assert out.shape == (S, B, E)
    # tolerance accommodates pl.reciprocal(approx=True) in the softmax denominator
    assert jnp.allclose(out, ref, atol=2e-3, rtol=2e-3), "mismatch vs reference"

    print("KERNEL_OK")
</pallas_src>

<mosaic_0001>
module attributes {stable_mosaic.version = 11 : i64} {
  func.func @encoder_layer_kernel(%arg0: memref<16x32xf32, #tpu.memory_space<vmem>>, %arg1: memref<16x32xf32, #tpu.memory_space<vmem>>, %arg2: memref<200x128xf32, #tpu.memory_space<vmem>>, %arg3: memref<16x32xf32, #tpu.memory_space<vmem>>) attributes {dimension_semantics = [], scalar_prefetch = 0 : i64, scratch_operands = 0 : i64, tpu.core_type = #tpu.core_type<tc>} {
    %c0 = arith.constant 0 : index
    %c0_0 = arith.constant 0 : index
    %0 = vector.load %arg0[%c0, %c0_0] : memref<16x32xf32, #tpu.memory_space<vmem>>, vector<16x32xf32>
    %c0_1 = arith.constant 0 : index
    %c0_2 = arith.constant 0 : index
    %1 = vector.load %arg1[%c0_1, %c0_2] : memref<16x32xf32, #tpu.memory_space<vmem>>, vector<16x32xf32>
    %2 = tpu.iota {dimensions = array<i32: 0>} : vector<16x16xi32>
    %3 = tpu.iota {dimensions = array<i32: 1>} : vector<16x16xi32>
    %c2_i32 = arith.constant 2 : i32
    %c0_i32 = arith.constant 0 : i32
    %4 = arith.cmpi eq, %c2_i32, %c0_i32 : i32
    %c1_i32 = arith.constant 1 : i32
    %5 = arith.select %4, %c1_i32, %c2_i32 : i32
    %6 = vector.broadcast %5 : i32 to vector<16x16xi32>
    %7 = arith.remsi %2, %6 : vector<16x16xi32>
    %c0_i32_3 = arith.constant 0 : i32
    %8 = vector.broadcast %c0_i32_3 : i32 to vector<16x16xi32>
    %9 = arith.cmpi ne, %7, %8 : vector<16x16xi32>
    %c0_i32_4 = arith.constant 0 : i32
    %10 = vector.broadcast %c0_i32_4 : i32 to vector<16x16xi32>
    %11 = arith.cmpi slt, %7, %10 : vector<16x16xi32>
    %c0_i32_5 = arith.constant 0 : i32
    %12 = arith.cmpi slt, %5, %c0_i32_5 : i32
    %13 = vector.broadcast %12 : i1 to vector<16x16xi1>
    %14 = vector.broadcast %13 : vector<16x16xi1> to vector<16x16xi1>
    %15 = arith.xori %11, %14 : vector<16x16xi1>
    %16 = arith.andi %15, %9 : vector<16x16xi1>
    %17 = vector.broadcast %5 : i32 to vector<16x16xi32>
    %18 = arith.addi %7, %17 : vector<16x16xi32>
    %19 = arith.select %16, %18, %7 : vector<16x16xi1>, vector<16x16xi32>
    %c2_i32_6 = arith.constant 2 : i32
    %c0_i32_7 = arith.constant 0 : i32
    %20 = arith.cmpi eq, %c2_i32_6, %c0_i32_7 : i32
    %c1_i32_8 = arith.constant 1 : i32
    %21 = arith.select %20, %c1_i32_8, %c2_i32_6 : i32
    %22 = vector.broadcast %21 : i32 to vector<16x16xi32>
    %23 = arith.remsi %3, %22 : vector<16x16xi32>
    %c0_i32_9 = arith.constant 0 : i32
    %24 = vector.broadcast %c0_i32_9 : i32 to vector<16x16xi32>
    %25 = arith.cmpi ne, %23, %24 : vector<16x16xi32>
    %c0_i32_10 = arith.constant 0 : i32
    %26 = vector.broadcast %c0_i32_10 : i32 to vector<16x16xi32>
    %27 = arith.cmpi slt, %23, %26 : vector<16x16xi32>
    %c0_i32_11 = arith.constant 0 : i32
    %28 = arith.cmpi slt, %21, %c0_i32_11 : i32
    %29 = vector.broadcast %28 : i1 to vector<16x16xi1>
    %30 = vector.broadcast %29 : vector<16x16xi1> to vector<16x16xi1>
    %31 = arith.xori %27, %30 : vector<16x16xi1>
    %32 = arith.andi %31, %25 : vector<16x16xi1>
    %33 = vector.broadcast %21 : i32 to vector<16x16xi32>
    %34 = arith.addi %23, %33 : vector<16x16xi32>
    %35 = arith.select %32, %34, %23 : vector<16x16xi1>, vector<16x16xi32>
    %36 = arith.cmpi eq, %19, %35 : vector<16x16xi32>
    %37 = tpu.concatenate %0, %1 in 1 : vector<16x32xf32>, vector<16x32xf32> -> vector<16x64xf32>
    %c0_12 = arith.constant 0 : index
    %c0_13 = arith.constant 0 : index
    %38 = vector.load %arg2[%c0_12, %c0_13] : memref<200x128xf32, #tpu.memory_space<vmem>>, vector<64x96xf32>
    %cst = arith.constant dense<0.000000e+00> : vector<16x96xf32>
    %39 = tpu.matmul %37, %38, %cst {dimension_numbers = #tpu.dot_dimension_numbers<[1], [0], [0], [1], [0, 0, 1, 1], [], []>} : vector<16x64xf32>, vector<64x96xf32>, vector<16x96xf32> -> vector<16x96xf32>
    %c192 = arith.constant 192 : index
    %c0_14 = arith.constant 0 : index
    %40 = vector.load %arg2[%c192, %c0_14] : memref<200x128xf32, #tpu.memory_space<vmem>>, vector<1x96xf32>
    %41 = vector.broadcast %40 : vector<1x96xf32> to vector<16x96xf32>
    %42 = arith.addf %39, %41 : vector<16x96xf32>
    %43 = vector.extract_strided_slice %42 {offsets = [0, 0], sizes = [16, 8], strides = [1, 1]} : vector<16x96xf32> to vector<16x8xf32>
    %44 = vector.extract_strided_slice %42 {offsets = [0, 32], sizes = [16, 8], strides = [1, 1]} : vector<16x96xf32> to vector<16x8xf32>
    %45 = vector.extract_strided_slice %42 {offsets = [0, 64], sizes = [16, 8], strides = [1, 1]} : vector<16x96xf32> to vector<16x8xf32>
    %cst_15 = arith.constant dense<0.000000e+00> : vector<16x16xf32>
    %46 = tpu.matmul %43, %44, %cst_15 {dimension_numbers = #tpu.dot_dimension_numbers<[1], [1], [0], [0], [0, 0, 1, 0], [], []>} : vector<16x8xf32>, vector<16x8xf32>, vector<16x16xf32> -> vector<16x16xf32>
    %cst_16 = arith.constant -1.000000e+30 : f32
    %47 = vector.broadcast %cst_16 : f32 to vector<16x16xf32>
    %48 = arith.select %36, %46, %47 : vector<16x16xi1>, vector<16x16xf32>
    %cst_17 = arith.constant dense<0xFF800000> : vector<16xf32>
    %49 = vector.multi_reduction <maximumf>, %48, %cst_17 [1] : vector<16x16xf32> to vector<16xf32>
    %50 = vector.shape_cast %49 : vector<16xf32> to vector<16x1xf32>
    %51 = vector.broadcast %50 : vector<16x1xf32> to vector<16x16xf32>
    %52 = arith.subf %48, %51 : vector<16x16xf32>
    %53 = math.exp %52 : vector<16x16xf32>
    %cst_18 = arith.constant dense<0.000000e+00> : vector<16xf32>
    %54 = vector.multi_reduction <add>, %53, %cst_18 [1] : vector<16x16xf32> to vector<16xf32>
    %55 = vector.shape_cast %54 : vector<16xf32> to vector<16x1xf32>
    %56 = tpu.reciprocal %55 {approx = true} : vector<16x1xf32> -> vector<16x1xf32>
    %57 = vector.broadcast %56 : vector<16x1xf32> to vector<16x16xf32>
    %58 = arith.mulf %53, %57 : vector<16x16xf32>
    %cst_19 = arith.constant dense<0.000000e+00> : vector<16x8xf32>
    %59 = tpu.matmul %58, %45, %cst_19 {dimension_numbers = #tpu.dot_dimension_numbers<[1], [0], [0], [1], [0, 0, 1, 1], [], []>} : vector<16x16xf32>, vector<16x8xf32>, vector<16x8xf32> -> vector<16x8xf32>
    %60 = vector.extract_strided_slice %42 {offsets = [0, 8], sizes = [16, 8], strides = [1, 1]} : vector<16x96xf32> to vector<16x8xf32>
    %61 = vector.extract_strided_slice %42 {offsets = [0, 40], sizes = [16, 8], strides = [1, 1]} : vector<16x96xf32> to vector<16x8xf32>
    %62 = vector.extract_strided_slice %42 {offsets = [0, 72], sizes = [16, 8], strides = [1, 1]} : vector<16x96xf32> to vector<16x8xf32>
    %cst_20 = arith.constant dense<0.000000e+00> : vector<16x16xf32>
    %63 = tpu.matmul %60, %61, %cst_20 {dimension_numbers = #tpu.dot_dimension_numbers<[1], [1], [0], [0], [0, 0, 1, 0], [], []>} : vector<16x8xf32>, vector<16x8xf32>, vector<16x16xf32> -> vector<16x16xf32>
    %cst_21 = arith.constant -1.000000e+30 : f32
    %64 = vector.broadcast %cst_21 : f32 to vector<16x16xf32>
    %65 = arith.select %36, %63, %64 : vector<16x16xi1>, vector<16x16xf32>
    %cst_22 = arith.constant dense<0xFF800000> : vector<16xf32>
    %66 = vector.multi_reduction <maximumf>, %65, %cst_22 [1] : vector<16x16xf32> to vector<16xf32>
    %67 = vector.shape_cast %66 : vector<16xf32> to vector<16x1xf32>
    %68 = vector.broadcast %67 : vector<16x1xf32> to vector<16x16xf32>
    %69 = arith.subf %65, %68 : vector<16x16xf32>
    %70 = math.exp %69 : vector<16x16xf32>
    %cst_23 = arith.constant dense<0.000000e+00> : vector<16xf32>
    %71 = vector.multi_reduction <add>, %70, %cst_23 [1] : vector<16x16xf32> to vector<16xf32>
    %72 = vector.shape_cast %71 : vector<16xf32> to vector<16x1xf32>
    %73 = tpu.reciprocal %72 {approx = true} : vector<16x1xf32> -> vector<16x1xf32>
    %74 = vector.broadcast %73 : vector<16x1xf32> to vector<16x16xf32>
    %75 = arith.mulf %70, %74 : vector<16x16xf32>
    %cst_24 = arith.constant dense<0.000000e+00> : vector<16x8xf32>
    %76 = tpu.matmul %75, %62, %cst_24 {dimension_numbers = #tpu.dot_dimension_numbers<[1], [0], [0], [1], [0, 0, 1, 1], [], []>} : vector<16x16xf32>, vector<16x8xf32>, vector<16x8xf32> -> vector<16x8xf32>
    %77 = vector.extract_strided_slice %42 {offsets = [0, 16], sizes = [16, 8], strides = [1, 1]} : vector<16x96xf32> to vector<16x8xf32>
    %78 = vector.extract_strided_slice %42 {offsets = [0, 48], sizes = [16, 8], strides = [1, 1]} : vector<16x96xf32> to vector<16x8xf32>
    %79 = vector.extract_strided_slice %42 {offsets = [0, 80], sizes = [16, 8], strides = [1, 1]} : vector<16x96xf32> to vector<16x8xf32>
    %cst_25 = arith.constant dense<0.000000e+00> : vector<16x16xf32>
    %80 = tpu.matmul %77, %78, %cst_25 {dimension_numbers = #tpu.dot_dimension_numbers<[1], [1], [0], [0], [0, 0, 1, 0], [], []>} : vector<16x8xf32>, vector<16x8xf32>, vector<16x16xf32> -> vector<16x16xf32>
    %cst_26 = arith.constant -1.000000e+30 : f32
    %81 = vector.broadcast %cst_26 : f32 to vector<16x16xf32>
    %82 = arith.select %36, %80, %81 : vector<16x16xi1>, vector<16x16xf32>
    %cst_27 = arith.constant dense<0xFF800000> : vector<16xf32>
    %83 = vector.multi_reduction <maximumf>, %82, %cst_27 [1] : vector<16x16xf32> to vector<16xf32>
    %84 = vector.shape_cast %83 : vector<16xf32> to vector<16x1xf32>
    %85 = vector.broadcast %84 : vector<16x1xf32> to vector<16x16xf32>
    %86 = arith.subf %82, %85 : vector<16x16xf32>
    %87 = math.exp %86 : vector<16x16xf32>
    %cst_28 = arith.constant dense<0.000000e+00> : vector<16xf32>
    %88 = vector.multi_reduction <add>, %87, %cst_28 [1] : vector<16x16xf32> to vector<16xf32>
    %89 = vector.shape_cast %88 : vector<16xf32> to vector<16x1xf32>
    %90 = tpu.reciprocal %89 {approx = true} : vector<16x1xf32> -> vector<16x1xf32>
    %91 = vector.broadcast %90 : vector<16x1xf32> to vector<16x16xf32>
    %92 = arith.mulf %87, %91 : vector<16x16xf32>
    %cst_29 = arith.constant dense<0.000000e+00> : vector<16x8xf32>
    %93 = tpu.matmul %92, %79, %cst_29 {dimension_numbers = #tpu.dot_dimension_numbers<[1], [0], [0], [1], [0, 0, 1, 1], [], []>} : vector<16x16xf32>, vector<16x8xf32>, vector<16x8xf32> -> vector<16x8xf32>
    %94 = vector.extract_strided_slice %42 {offsets = [0, 24], sizes = [16, 8], strides = [1, 1]} : vector<16x96xf32> to vector<16x8xf32>
    %95 = vector.extract_strided_slice %42 {offsets = [0, 56], sizes = [16, 8], strides = [1, 1]} : vector<16x96xf32> to vector<16x8xf32>
    %96 = vector.extract_strided_slice %42 {offsets = [0, 88], sizes = [16, 8], strides = [1, 1]} : vector<16x96xf32> to vector<16x8xf32>
    %cst_30 = arith.constant dense<0.000000e+00> : vector<16x16xf32>
    %97 = tpu.matmul %94, %95, %cst_30 {dimension_numbers = #tpu.dot_dimension_numbers<[1], [1], [0], [0], [0, 0, 1, 0], [], []>} : vector<16x8xf32>, vector<16x8xf32>, vector<16x16xf32> -> vector<16x16xf32>
    %cst_31 = arith.constant -1.000000e+30 : f32
    %98 = vector.broadcast %cst_31 : f32 to vector<16x16xf32>
    %99 = arith.select %36, %97, %98 : vector<16x16xi1>, vector<16x16xf32>
    %cst_32 = arith.constant dense<0xFF800000> : vector<16xf32>
    %100 = vector.multi_reduction <maximumf>, %99, %cst_32 [1] : vector<16x16xf32> to vector<16xf32>
    %101 = vector.shape_cast %100 : vector<16xf32> to vector<16x1xf32>
    %102 = vector.broadcast %101 : vector<16x1xf32> to vector<16x16xf32>
    %103 = arith.subf %99, %102 : vector<16x16xf32>
    %104 = math.exp %103 : vector<16x16xf32>
    %cst_33 = arith.constant dense<0.000000e+00> : vector<16xf32>
    %105 = vector.multi_reduction <add>, %104, %cst_33 [1] : vector<16x16xf32> to vector<16xf32>
    %106 = vector.shape_cast %105 : vector<16xf32> to vector<16x1xf32>
    %107 = tpu.reciprocal %106 {approx = true} : vector<16x1xf32> -> vector<16x1xf32>
    %108 = vector.broadcast %107 : vector<16x1xf32> to vector<16x16xf32>
    %109 = arith.mulf %104, %108 : vector<16x16xf32>
    %cst_34 = arith.constant dense<0.000000e+00> : vector<16x8xf32>
    %110 = tpu.matmul %109, %96, %cst_34 {dimension_numbers = #tpu.dot_dimension_numbers<[1], [0], [0], [1], [0, 0, 1, 1], [], []>} : vector<16x16xf32>, vector<16x8xf32>, vector<16x8xf32> -> vector<16x8xf32>
    %111 = tpu.concatenate %59, %76, %93, %110 in 1 : vector<16x8xf32>, vector<16x8xf32>, vector<16x8xf32>, vector<16x8xf32> -> vector<16x32xf32>
    %c160 = arith.constant 160 : index
    %c0_35 = arith.constant 0 : index
    %112 = vector.load %arg2[%c160, %c0_35] : memref<200x128xf32, #tpu.memory_space<vmem>>, vector<32x32xf32>
    %cst_36 = arith.constant dense<0.000000e+00> : vector<16x32xf32>
    %113 = tpu.matmul %111, %112, %cst_36 {dimension_numbers = #tpu.dot_dimension_numbers<[1], [0], [0], [1], [0, 0, 1, 1], [], []>} : vector<16x32xf32>, vector<32x32xf32>, vector<16x32xf32> -> vector<16x32xf32>
    %c194 = arith.constant 194 : index
    %c0_37 = arith.constant 0 : index
    %114 = vector.load %arg2[%c194, %c0_37] : memref<200x128xf32, #tpu.memory_space<vmem>>, vector<1x32xf32>
    %115 = vector.broadcast %114 : vector<1x32xf32> to vector<16x32xf32>
    %116 = arith.addf %113, %115 : vector<16x32xf32>
    %117 = arith.addf %0, %116 : vector<16x32xf32>
    %c196 = arith.constant 196 : index
    %c0_38 = arith.constant 0 : index
    %118 = vector.load %arg2[%c196, %c0_38] : memref<200x128xf32, #tpu.memory_space<vmem>>, vector<1x32xf32>
    %c197 = arith.constant 197 : index
    %c0_39 = arith.constant 0 : index
    %119 = vector.load %arg2[%c197, %c0_39] : memref<200x128xf32, #tpu.memory_space<vmem>>, vector<1x32xf32>
    %cst_40 = arith.constant dense<0.000000e+00> : vector<16xf32>
    %120 = vector.multi_reduction <add>, %117, %cst_40 [1] : vector<16x32xf32> to vector<16xf32>
    %121 = vector.shape_cast %120 : vector<16xf32> to vector<16x1xf32>
    %cst_41 = arith.constant 3.200000e+01 : f32
    %122 = vector.broadcast %cst_41 : f32 to vector<16x1xf32>
    %123 = arith.divf %121, %122 : vector<16x1xf32>
    %124 = arith.mulf %117, %117 : vector<16x32xf32>
    %cst_42 = arith.constant dense<0.000000e+00> : vector<16xf32>
    %125 = vector.multi_reduction <add>, %124, %cst_42 [1] : vector<16x32xf32> to vector<16xf32>
    %126 = vector.shape_cast %125 : vector<16xf32> to vector<16x1xf32>
    %cst_43 = arith.constant 3.200000e+01 : f32
    %127 = vector.broadcast %cst_43 : f32 to vector<16x1xf32>
    %128 = arith.divf %126, %127 : vector<16x1xf32>
    %129 = arith.mulf %123, %123 : vector<16x1xf32>
    %130 = arith.subf %128, %129 : vector<16x1xf32>
    %131 = vector.broadcast %123 : vector<16x1xf32> to vector<16x32xf32>
    %132 = arith.subf %117, %131 : vector<16x32xf32>
    %cst_44 = arith.constant 9.99999974E-6 : f32
    %133 = vector.broadcast %cst_44 : f32 to vector<16x1xf32>
    %134 = arith.addf %130, %133 : vector<16x1xf32>
    %135 = math.rsqrt %134 : vector<16x1xf32>
    %136 = vector.broadcast %135 : vector<16x1xf32> to vector<16x32xf32>
    %137 = arith.mulf %132, %136 : vector<16x32xf32>
    %138 = vector.broadcast %118 : vector<1x32xf32> to vector<16x32xf32>
    %139 = arith.mulf %137, %138 : vector<16x32xf32>
    %140 = vector.broadcast %119 : vector<1x32xf32> to vector<16x32xf32>
    %141 = arith.addf %139, %140 : vector<16x32xf32>
    %c64 = arith.constant 64 : index
    %c0_45 = arith.constant 0 : index
    %142 = vector.load %arg2[%c64, %c0_45] : memref<200x128xf32, #tpu.memory_space<vmem>>, vector<32x64xf32>
    %cst_46 = arith.constant dense<0.000000e+00> : vector<16x64xf32>
    %143 = tpu.matmul %141, %142, %cst_46 {dimension_numbers = #tpu.dot_dimension_numbers<[1], [0], [0], [1], [0, 0, 1, 1], [], []>} : vector<16x32xf32>, vector<32x64xf32>, vector<16x64xf32> -> vector<16x64xf32>
    %c193 = arith.constant 193 : index
    %c0_47 = arith.constant 0 : index
    %144 = vector.load %arg2[%c193, %c0_47] : memref<200x128xf32, #tpu.memory_space<vmem>>, vector<1x64xf32>
    %145 = vector.broadcast %144 : vector<1x64xf32> to vector<16x64xf32>
    %146 = arith.addf %143, %145 : vector<16x64xf32>
    %cst_48 = arith.constant 0.000000e+00 : f32
    %147 = vector.broadcast %cst_48 : f32 to vector<16x64xf32>
    %148 = arith.maximumf %146, %147 : vector<16x64xf32>
    %c96 = arith.constant 96 : index
    %c0_49 = arith.constant 0 : index
    %149 = vector.load %arg2[%c96, %c0_49] : memref<200x128xf32, #tpu.memory_space<vmem>>, vector<64x32xf32>
    %cst_50 = arith.constant dense<0.000000e+00> : vector<16x32xf32>
    %150 = tpu.matmul %148, %149, %cst_50 {dimension_numbers = #tpu.dot_dimension_numbers<[1], [0], [0], [1], [0, 0, 1, 1], [], []>} : vector<16x64xf32>, vector<64x32xf32>, vector<16x32xf32> -> vector<16x32xf32>
    %c195 = arith.constant 195 : index
    %c0_51 = arith.constant 0 : index
    %151 = vector.load %arg2[%c195, %c0_51] : memref<200x128xf32, #tpu.memory_space<vmem>>, vector<1x32xf32>
    %152 = vector.broadcast %151 : vector<1x32xf32> to vector<16x32xf32>
    %153 = arith.addf %150, %152 : vector<16x32xf32>
    %154 = arith.addf %141, %153 : vector<16x32xf32>
    %c198 = arith.constant 198 : index
    %c0_52 = arith.constant 0 : index
    %155 = vector.load %arg2[%c198, %c0_52] : memref<200x128xf32, #tpu.memory_space<vmem>>, vector<1x32xf32>
    %c199 = arith.constant 199 : index
    %c0_53 = arith.constant 0 : index
    %156 = vector.load %arg2[%c199, %c0_53] : memref<200x128xf32, #tpu.memory_space<vmem>>, vector<1x32xf32>
    %cst_54 = arith.constant dense<0.000000e+00> : vector<16xf32>
    %157 = vector.multi_reduction <add>, %154, %cst_54 [1] : vector<16x32xf32> to vector<16xf32>
    %158 = vector.shape_cast %157 : vector<16xf32> to vector<16x1xf32>
    %cst_55 = arith.constant 3.200000e+01 : f32
    %159 = vector.broadcast %cst_55 : f32 to vector<16x1xf32>
    %160 = arith.divf %158, %159 : vector<16x1xf32>
    %161 = arith.mulf %154, %154 : vector<16x32xf32>
    %cst_56 = arith.constant dense<0.000000e+00> : vector<16xf32>
    %162 = vector.multi_reduction <add>, %161, %cst_56 [1] : vector<16x32xf32> to vector<16xf32>
    %163 = vector.shape_cast %162 : vector<16xf32> to vector<16x1xf32>
    %cst_57 = arith.constant 3.200000e+01 : f32
    %164 = vector.broadcast %cst_57 : f32 to vector<16x1xf32>
    %165 = arith.divf %163, %164 : vector<16x1xf32>
    %166 = arith.mulf %160, %160 : vector<16x1xf32>
    %167 = arith.subf %165, %166 : vector<16x1xf32>
    %168 = vector.broadcast %160 : vector<16x1xf32> to vector<16x32xf32>
    %169 = arith.subf %154, %168 : vector<16x32xf32>
    %cst_58 = arith.constant 9.99999974E-6 : f32
    %170 = vector.broadcast %cst_58 : f32 to vector<16x1xf32>
    %171 = arith.addf %167, %170 : vector<16x1xf32>
    %172 = math.rsqrt %171 : vector<16x1xf32>
    %173 = vector.broadcast %172 : vector<16x1xf32> to vector<16x32xf32>
    %174 = arith.mulf %169, %173 : vector<16x32xf32>
    %175 = vector.broadcast %155 : vector<1x32xf32> to vector<16x32xf32>
    %176 = arith.mulf %174, %175 : vector<16x32xf32>
    %177 = vector.broadcast %156 : vector<1x32xf32> to vector<16x32xf32>
    %178 = arith.addf %176, %177 : vector<16x32xf32>
    %c0_59 = arith.constant 0 : index
    %c0_60 = arith.constant 0 : index
    %179 = vector.load %arg3[%c0_59, %c0_60] : memref<16x32xf32, #tpu.memory_space<vmem>>, vector<16x32xf32>
    tpu.vector_store %arg3[%c0_59, %c0_60], %178 {strides = array<i32>} : memref<16x32xf32, #tpu.memory_space<vmem>>, vector<16x32xf32>,
    return
  }
}

</mosaic_0001>

<bundles_post_ra>
// kernel: encoder_layer.1
= control target key start
LH: loop header
LB: loop body
LE: loop exit
PB: predicated region body
PF: predicated region fallthrough
CT: control target
= control target key end

     0   :  { %8 = vsyncpa [#allocation3], 0  ;;  %s1291_s0 = inlined_call_operand.hbm [shape: f32[16,32], index: 0, kind: input, shape index: {}]   ;;  %s1292_s1 = inlined_call_operand.hbm [shape: f32[16,32], index: 1, kind: input, shape index: {}]   ;;  %s1293_s2 = inlined_call_operand.hbm [shape: f32[200,128], index: 2, kind: input, shape index: {}]   ;;  %s1294_s3 = inlined_call_operand.hbm [shape: f32[16,32], index: 3, kind: output, shape index: {}]  }
   0x1   :  { %9 = vsyncpa [#allocation6], 0 }
   0x2   :  { %10 = vsyncpa [#allocation4], 0  ;;  %s28_s14 = sshll.u32 %s1292_s1, 4  ;;  %s1072_s15 = smov [#allocation5]   ;;  %s29_s14 = int_to_ptr.hbm [resolvable:$true] %s28_s14 }
   0x3   :  { %s30_s16 = sshll.u32 %s1072_s15, 4  ;;  %s15_s19 = sshll.u32 %s1291_s0, 4  ;;  %s31_s16 = int_to_ptr.vmem [resolvable:$true] %s30_s16  ;;  %s16_s19 = int_to_ptr.hbm [resolvable:$true] %s15_s19 }
   0x4   :  { %s1073_s20 = smov 128   ;;  %s1074_s21 = smov 8  }
   0x5   :  { %36 = dma.hbm_to_vmem [thread:$0]  %s29_s14, 256, %s31_s16, [#allocation6], %s1073_s20, %s1073_s20, %s1074_s21  }
   0x6   :  { %s1075_s22 = smov [#allocation2]   ;;  %s41_s1 = sshll.u32 %s1293_s2, 4  ;;  %s42_s1 = int_to_ptr.hbm [resolvable:$true] %s41_s1 }
   0x7   :  { %s17_s23 = sshll.u32 %s1075_s22, 4  ;;  %s1076_s0 = smov [#allocation7]   ;;  %s18_s23 = int_to_ptr.vmem [resolvable:$true] %s17_s23 }
   0x8   :  { %23 = dma.hbm_to_vmem [thread:$0]  %s16_s19, 256, %s18_s23, [#allocation3], %s1073_s20, %s1073_s20, %s1074_s21  }
   0x9   :  { %s43_s26 = sshll.u32 %s1076_s0, 4  ;;  %s44_s26 = int_to_ptr.vmem [resolvable:$true] %s43_s26 }
   0xa   :  { %49 = dma.hbm_to_vmem [thread:$0]  %s42_s1, 3200, %s44_s26, [#allocation6], %s1073_s20, %s1073_s20, %s1074_s21  }
   0xb   :  { %1066 = dma.done.wait [#allocation3], 256  }
   0xc   :  { %1067 = vsyncadd [#allocation3], 4294967040 }
   0xd   :  { %1068 = dma.done.wait [#allocation6], 3456  }
   0xe   :  { %1069 = vsyncadd [#allocation6], 4294963840  ;;  %v64_v0 = vld [vmem:[#allocation5] sm:$0xff]  ;;  %v127_v1 = vld [vmem:[#allocation7 + $0x38] sm:$0xff]  ;;  %s1077_s2 = smov 32   ;;  %vm117_vm0 = vcmask 261120   ;;  %v66_v35 = vlaneseq }
   0xf   :  { %111 = vrot.lane.b32.xlu0 %v64_v0, %s1077_s2  ;;  %145 = vmatpush.msra.mxu0 %v127_v1  ;;  %v126_v2 = vld [vmem:[#allocation7 + $0x30] sm:$0xff]  ;;  %v125_v3 = vld [vmem:[#allocation7 + $0x28] sm:$0xff]  ;;  %v124_v4 = vld [vmem:[#allocation7 + $0x20] sm:$0xff]  ;;  %vm130_vm1 = vcmask 523264   ;;  %s1078_s27 = smov 120   ;;  %s1079_s28 = smov 88  }
  0x10   :  { %v65_v5 = vld [vmem:[#allocation5 + $0x8] sm:$0xff]  ;;  %v122_v7 = vld [vmem:[#allocation7 + $0x10] sm:$0xff]  ;;  %v121_v8 = vld [vmem:[#allocation7 + $0x8] sm:$0xff]  ;;  %s1080_s29 = smov 96   ;;  %s1081_s30 = smov 72   ;;  %vm166_vm2 = vcmask 64512  }
  0x11   :  { %146 = vmatpush.msra.mxu0 %v126_v2  ;;  %v123_v6 = vld [vmem:[#allocation7 + $0x18] sm:$0xff]  ;;  %v120_v9 = vld [vmem:[#allocation7] sm:$0xff]  ;;  %v1136_v13 = vld [vmem:[#allocation2 + $0x8] sm:$0xff]  ;;  %s1082_s4 = smov 112   ;;  %s1083_s5 = smov 80   ;;  %v67_v36 = vshrl.u32 %v66_v35, 7 }
  0x12   :  { %v1131_v10 = vld [vmem:[#allocation2] sm:$0xff]  ;;  %s1084_s6 = smov 104   ;;  %v70_v37 = vand.u32 127, %v66_v35  ;;  %vm200_vm4 = vcmask 130048   ;;  %s1085_s7 = smov 64   ;;  %vm580_vm6 = vcmask 195584  }
  0x13   :  { %147 = vmatpush.msra.mxu0 %v125_v3  ;;  %v920_v16 = vld [vmem:[#allocation7 + $0xc0] ss:$0 sm:$0xff]  ;;  %v75_v38 = vand.u32 1, %v67_v36  ;;  %v68_v48 = vadd.s32 8, %v67_v36  ;;  %s1086_s8 = smov 56   ;;  %s1087_s9 = smov 48  }
  0x14   :  { %v99_v39 = vand.u32 1, %v70_v37  ;;  %s1088_s10 = smov 40   ;;  %s1089_s11 = smov 16  }
  0x15   :  { %148 = vmatpush.msra.mxu0 %v124_v4  ;;  %v82_v50 = vand.u32 1, %v68_v48  ;;  %s1090_s12 = smov 24   ;;  %s1092_s13 = smov [#allocation8]  }
  0x16   :  { %vm1177_vm3 = vcmp.eq.s32.totalorder %v75_v38, %v99_v39  ;;  %s823_s14 = sshll.u32 %s1092_s13, 4  ;;  %s825_s17 = sshll.u32 %s1294_s3, 4  ;;  %s824_s14 = int_to_ptr.vmem [resolvable:$true] %s823_s14  ;;  %s826_s17 = int_to_ptr.hbm [resolvable:$true] %s825_s17 }
  0x17   :  { %113 = vrot.lane.b32.xlu0 %v65_v5, %s1077_s2  ;;  %149 = vmatpush.msra.mxu0 %v123_v6  ;;  %vm108_vm5 = vcmp.eq.s32.totalorder %v82_v50, %v99_v39 }
  0x19   :  { %150 = vmatpush.msra.mxu0 %v122_v7 }
  0x1b   :  { %151 = vmatpush.msra.mxu0 %v121_v8 }
  0x1d   :  { %152 = vmatpush.msra.mxu0 %v120_v9 }
  0x81   :  { %v112_v11 = vpop.permute.xlu0 %111 }
  0x82   :  { %v118_v12 = vsel %vm117_vm0, %v1131_v10, %v112_v11 }
  0x83   :  { %839 = vmatmul.msk.f32.vlgmr.msra.gmra.mxu0 %vm130_vm1, %v118_v12 }
  0x89   :  { %v114_v14 = vpop.permute.xlu0 %113 }
  0x8a   :  { %v119_v15 = vsel %vm117_vm0, %v1136_v13, %v114_v14 }
  0x8b   :  { %840 = vmatmul.msk.f32.gmra.mxu0 %vm130_vm1, %v119_v15 }
 0x100   :  { %v154_v17 = vpop.f32.mrf.mxu0 }
 0x101   :  { %v1141_v18 = vadd.f32 %v920_v16, %v154_v17 }
 0x103   :  { %258 = vrot.lane.b32.xlu0 %v1141_v18, %s1078_s27 }
 0x108   :  { %v157_v19 = vpop.f32.mrf.mxu0 }
 0x109   :  { %v1144_v20 = vadd.f32 %v920_v16, %v157_v19 }
 0x10b   :  { %264 = vrot.lane.b32.xlu2 %v1144_v20, %s1079_s28  ;;  %164 = vrot.lane.b32.xlu1 %v1144_v20, %s1080_s29  ;;  %v900_v3 = vpack.i.bf16 %v1141_v18, %v1144_v20 }
 0x10c   :  { %460 = vrot.lane.b32.xlu0 %v1144_v20, %s1081_s30 }
 0x113   :  { %262 = vrot.lane.b32.xlu2 %v1141_v18, %s1079_s28  ;;  %162 = vrot.lane.b32.xlu1 %v1141_v18, %s1080_s29 }
 0x114   :  { %356 = vrot.lane.b32.xlu0 %v1141_v18, %s1082_s4 }
 0x11b   :  { %362 = vrot.lane.b32.xlu2 %v1144_v20, %s1083_s5  ;;  %260 = vrot.lane.b32.xlu1 %v1144_v20, %s1078_s27 }
 0x11c   :  { %456 = vrot.lane.b32.xlu0 %v1144_v20, %s1084_s6 }
 0x123   :  { %458 = vrot.lane.b32.xlu2 %v1141_v18, %s1081_s30  ;;  %360 = vrot.lane.b32.xlu1 %v1141_v18, %s1083_s5 }
 0x12b   :  { %358 = vrot.lane.b32.xlu2 %v1144_v20, %s1082_s4  ;;  %454 = vrot.lane.b32.xlu1 %v1141_v18, %s1084_s6 }
 0x165   :  { %v265_v21 = vpop.permute.xlu2 %264 }
 0x166   :  { %847 = vmatpush.xpose.msk.msra.mxu3 %vm166_vm2, %v265_v21 }
 0x16d   :  { %v263_v22 = vpop.permute.xlu2 %262 }
 0x16e   :  { %848 = vmatpush.xpose.msk.msra.mxu3 %vm166_vm2, %v263_v22 }
 0x175   :  { %v259_v23 = vpop.permute.xlu0 %258  ;;  %v363_v24 = vpop.permute.xlu2 %362 }
 0x176   :  { %849 = vmatmul.msk.f32.vlgmr.msra.gmra.mxu3 %vm166_vm2, %v259_v23 }
 0x17d   :  { %v165_v25 = vpop.permute.xlu1 %164  ;;  %v459_v27 = vpop.permute.xlu2 %458 }
 0x17e   :  { %v461_v26 = vpop.permute.xlu0 %460  ;;  %841 = vmatpush.xpose.msk.msra.mxu1 %vm166_vm2, %v165_v25 }
 0x17f   :  { %859 = vmatpush.xpose.msk.msrb.mxu0 %vm166_vm2, %v461_v26 }
 0x183   :  { %860 = vmatpush.xpose.msk.msrb.mxu0 %vm166_vm2, %v459_v27 }
 0x185   :  { %v163_v28 = vpop.permute.xlu1 %162  ;;  %v359_v33 = vpop.permute.xlu2 %358 }
 0x186   :  { %842 = vmatpush.xpose.msk.msra.mxu1 %vm166_vm2, %v163_v28  ;;  %v357_v31 = vpop.permute.xlu0 %356 }
 0x189   :  { %843 = vmatmul.msk.f32.vlgmr.msra.gmra.mxu1 %vm166_vm2, %v1141_v18 }
 0x18a   :  { %853 = vmatpush.xpose.msk.msrb.mxu1 %vm166_vm2, %v363_v24 }
 0x18d   :  { %v261_v29 = vpop.permute.xlu1 %260 }
 0x18e   :  { %850 = vmatmul.msk.f32.gmra.mxu3 %vm166_vm2, %v261_v29  ;;  %v457_v34 = vpop.permute.xlu0 %456 }
 0x191   :  { %844 = vmatmul.msk.f32.gmra.mxu1 %vm166_vm2, %v1144_v20 }
 0x195   :  { %v361_v30 = vpop.permute.xlu1 %360 }
 0x196   :  { %854 = vmatpush.xpose.msk.msrb.mxu1 %vm166_vm2, %v361_v30 }
 0x199   :  { %855 = vmatmul.msk.f32.vlgmr.msrb.gmra.mxu1 %vm166_vm2, %v357_v31 }
 0x19d   :  { %v455_v32 = vpop.permute.xlu1 %454 }
 0x19e   :  { %861 = vmatmul.msk.f32.vlgmr.msrb.gmra.mxu0 %vm166_vm2, %v455_v32 }
 0x1a1   :  { %856 = vmatmul.msk.f32.gmra.mxu1 %vm166_vm2, %v359_v33 }
 0x1a6   :  { %862 = vmatmul.msk.f32.gmra.mxu0 %vm166_vm2, %v457_v34 }
 0x1f9   :  { %v291_v41 = vpop.f32.mrf.mxu3 }
 0x1fa   :  { %v297_v42 = vsel %vm1177_vm3, %v291_v41, -1e+30 }
 0x1fb   :  { %v299_v43 = vsel %vm200_vm4, %v297_v42, -inf }
 0x1fc   :  { %300 = vmax.xlane.f32.xlu0 %v299_v43 }
 0x206   :  { %v192_v44 = vpop.f32.mrf.mxu1 }
 0x207   :  { %v198_v45 = vsel %vm1177_vm3, %v192_v44, -1e+30 }
 0x208   :  { %v201_v46 = vsel %vm200_vm4, %v198_v45, -inf }
 0x209   :  { %202 = vmax.xlane.f32.xlu1 %v201_v46 }
 0x20e   :  { %v195_v47 = vpop.f32.mrf.mxu1 }
 0x20f   :  { %v199_v57 = vsel %vm108_vm5, %v195_v47, -1e+30 }
 0x210   :  { %v204_v60 = vsel %vm200_vm4, %v199_v57, -inf }
 0x211   :  { %v294_v62 = vpop.f32.mrf.mxu3 }
 0x212   :  { %v298_v63 = vsel %vm108_vm5, %v294_v62, -1e+30 }
 0x213   :  { %v302_v1 = vsel %vm200_vm4, %v298_v63, -inf }
 0x216   :  { %v389_v49 = vpop.f32.mrf.mxu1 }
 0x217   :  { %v395_v0 = vsel %vm1177_vm3, %v389_v49, -1e+30 }
 0x218   :  { %v397_v2 = vsel %vm200_vm4, %v395_v0, -inf }
 0x21b   :  { %v487_v51 = vpop.f32.mrf.mxu0 }
 0x21c   :  { %v493_v52 = vsel %vm1177_vm3, %v487_v51, -1e+30 }
 0x21d   :  { %v495_v53 = vsel %vm200_vm4, %v493_v52, -inf }
 0x21e   :  { %v392_v54 = vpop.f32.mrf.mxu1  ;;  %496 = vmax.xlane.f32.xlu2 %v495_v53 }
 0x21f   :  { %v1190_v55 = vsel %vm108_vm5, %v392_v54, -1e+30 }
 0x220   :  { %v400_v56 = vsel %vm200_vm4, %v1190_v55, -inf }
 0x221   :  { %401 = vmax.xlane.f32.xlu0 %v400_v56 }
 0x223   :  { %v490_v58 = vpop.f32.mrf.mxu0 }
 0x224   :  { %v494_v59 = vsel %vm108_vm5, %v490_v58, -1e+30 }
 0x225   :  { %v498_v61 = vsel %vm200_vm4, %v494_v59, -inf }
 0x226   :  { %205 = vmax.xlane.f32.xlu2 %v204_v60  ;;  %499 = vmax.xlane.f32.xlu1 %v498_v61 }
 0x22e   :  { %303 = vmax.xlane.f32.xlu2 %v302_v1  ;;  %398 = vmax.xlane.f32.xlu1 %v397_v2 }
 0x235   :  { %901 = vrot.lane.b32.xlu0 %v900_v3, %s1085_s7 }
 0x26f   :  { %v301_v4 = vpop.xlane.xlu0 %300 }
 0x270   :  { %v305_v7 = vsub.f32 %v297_v42, %v301_v4 }
 0x272   :  { %v307_v9 = vmul.f32 1.442695, %v305_v7 }
 0x27c   :  { %v203_v5 = vpop.xlane.xlu1 %202 }
 0x27d   :  { %v207_v6 = vsub.f32 %v198_v45, %v203_v5 }
 0x27f   :  { %v209_v8 = vmul.f32 1.442695, %v207_v6 }
 0x281   :  { %928 = vpow2.f32 %v209_v8 }
 0x282   :  { %930 = vpow2.f32 %v307_v9 }
 0x287   :  { %v1202_v11 = vpop.eup %928 }
 0x288   :  { %v213_v12 = vsel %vm200_vm4, %v1202_v11, 0.0  ;;  %v1206_v14 = vpop.eup %930 }
 0x289   :  { %214 = vadd.xlane.f32.xlu2 %v213_v12  ;;  %v311_v15 = vsel %vm200_vm4, %v1206_v14, 0.0 }
 0x291   :  { %v497_v16 = vpop.xlane.xlu2 %496  ;;  %312 = vadd.xlane.f32.xlu2 %v311_v15 }
 0x292   :  { %v501_v27 = vsub.f32 %v493_v52, %v497_v16 }
 0x294   :  { %v402_v21 = vpop.xlane.xlu0 %401  ;;  %v503_v33 = vmul.f32 1.442695, %v501_v27 }
 0x295   :  { %v404_v45 = vsub.f32 %v1190_v55, %v402_v21 }
 0x297   :  { %v407_v46 = vmul.f32 1.442695, %v404_v45 }
 0x299   :  { %v206_v17 = vpop.xlane.xlu2 %205  ;;  %v500_v18 = vpop.xlane.xlu1 %499 }
 0x29a   :  { %v208_v19 = vsub.f32 %v199_v57, %v206_v17  ;;  %v502_v30 = vsub.f32 %v494_v59, %v500_v18 }
 0x29c   :  { %v211_v20 = vmul.f32 1.442695, %v208_v19  ;;  %v505_v35 = vmul.f32 1.442695, %v502_v30  ;;  %v584_v30 = vld [vmem:[#allocation7 + $0xa8] sm:$0xff] }
 0x29e   :  { %932 = vpow2.f32 %v211_v20 }
 0x2a1   :  { %v304_v22 = vpop.xlane.xlu2 %303  ;;  %v399_v23 = vpop.xlane.xlu1 %398 }
 0x2a2   :  { %v306_v24 = vsub.f32 %v298_v63, %v304_v22  ;;  %v403_v25 = vsub.f32 %v395_v0, %v399_v23 }
 0x2a4   :  { %v933_v26 = vpop.eup %932  ;;  %v309_v28 = vmul.f32 1.442695, %v306_v24  ;;  %v405_v29 = vmul.f32 1.442695, %v403_v25 }
 0x2a5   :  { %v216_v31 = vsel %vm200_vm4, %v933_v26, 0.0 }
 0x2a6   :  { %934 = vpow2.f32 %v309_v28  ;;  %217 = vadd.xlane.f32.xlu1 %v216_v31  ;;  %v586_v28 = vld [vmem:[#allocation7 + $0xb8] sm:$0xff]  ;;  %v583_v31 = vld [vmem:[#allocation7 + $0xa0] sm:$0xff] }
 0x2a7   :  { %936 = vpow2.f32 %v405_v29  ;;  %v902_v32 = vpop.permute.xlu0 %901  ;;  %v585_v29 = vld [vmem:[#allocation7 + $0xb0] sm:$0xff]  ;;  %607 = vmatpush.msra.mxu1 %v586_v28 }
 0x2a8   :  { %v903_v34 = vunpack.i.l.bf16 %v902_v32  ;;  %v904_v36 = vunpack.i.h.bf16 %v902_v32  ;;  %938 = vpow2.f32 %v503_v33 }
 0x2a9   :  { %940 = vpow2.f32 %v505_v35  ;;  %608 = vmatpush.msra.mxu1 %v585_v29 }
 0x2aa   :  { %249 = vmatpush.msra.mxu2 %v903_v34  ;;  %942 = vpow2.f32 %v407_v46 }
 0x2ab   :  { %609 = vmatpush.msra.mxu1 %v584_v30 }
 0x2ac   :  { %v1211_v37 = vpop.eup %934  ;;  %250 = vmatpush.msra.mxu2 %v904_v36 }
 0x2ad   :  { %v937_v38 = vpop.eup %936  ;;  %v314_v39 = vsel %vm200_vm4, %v1211_v37, 0.0  ;;  %610 = vmatpush.msra.mxu1 %v583_v31 }
 0x2ae   :  { %315 = vadd.xlane.f32.xlu2 %v314_v39  ;;  %v409_v40 = vsel %vm200_vm4, %v937_v38, 0.0  ;;  %v1216_v41 = vpop.eup %938 }
 0x2af   :  { %410 = vadd.xlane.f32.xlu0 %v409_v40  ;;  %v1218_v42 = vpop.eup %940  ;;  %v507_v43 = vsel %vm200_vm4, %v1216_v41, 0.0 }
 0x2b0   :  { %v510_v44 = vsel %vm200_vm4, %v1218_v42, 0.0  ;;  %v943_v47 = vpop.eup %942 }
 0x2b1   :  { %v412_v48 = vsel %vm200_vm4, %v943_v47, 0.0 }
 0x2b6   :  { %508 = vadd.xlane.f32.xlu2 %v507_v43 }
 0x2b7   :  { %511 = vadd.xlane.f32.xlu0 %v510_v44  ;;  %v921_v44 = vld [vmem:[#allocation7 + $0xc2] ss:$0 sm:$0xff] }
 0x2bf   :  { %906 = vrot.lane.b32.xlu1 %v900_v3, %s1086_s8 }
 0x2ce   :  { %911 = vrot.lane.b32.xlu2 %v900_v3, %s1087_s9 }
 0x2d6   :  { %916 = vrot.lane.b32.xlu2 %v900_v3, %s1088_s10 }
 0x2e9   :  { %413 = vadd.xlane.f32.xlu1 %v412_v48 }
 0x2fc   :  { %v215_v49 = vpop.xlane.xlu2 %214 }
 0x2fd   :  { %944 = vrcp.f32 %v215_v49 }
 0x303   :  { %v945_v50 = vpop.eup %944 }
 0x304   :  { %v221_v51 = vmul.f32 %v945_v50, %v1202_v11  ;;  %v313_v52 = vpop.xlane.xlu2 %312 }
 0x306   :  { %845 = vmatmul.msk.f32.vlgmr.msra.gmra.mxu2 %vm200_vm4, %v221_v51 }
 0x319   :  { %v218_v53 = vpop.xlane.xlu1 %217 }
 0x31a   :  { %946 = vrcp.f32 %v218_v53 }
 0x31b   :  { %948 = vrcp.f32 %v313_v52 }
 0x320   :  { %v947_v54 = vpop.eup %946 }
 0x321   :  { %v316_v56 = vpop.xlane.xlu2 %315  ;;  %v222_v57 = vmul.f32 %v947_v54, %v933_v26  ;;  %v949_v59 = vpop.eup %948 }
 0x322   :  { %v411_v55 = vpop.xlane.xlu0 %410  ;;  %v319_v3 = vmul.f32 %v949_v59, %v1206_v14 }
 0x323   :  { %846 = vmatmul.msk.f32.gmra.mxu2 %vm200_vm4, %v222_v57  ;;  %950 = vrcp.f32 %v411_v55  ;;  %v1091_v57 = vmov 32.0  }
 0x324   :  { %952 = vrcp.f32 %v316_v56 }
 0x329   :  { %v509_v58 = vpop.xlane.xlu2 %508  ;;  %v951_v62 = vpop.eup %950 }
 0x32a   :  { %v417_v4 = vmul.f32 %v951_v62, %v937_v38  ;;  %v953_v6 = vpop.eup %952  ;;  %954 = vrcp.f32 %v509_v58  ;;  %v512_v11 = vpop.xlane.xlu0 %511  ;;  %v685_v62 = vld [vmem:[#allocation7 + $0x50] sm:$0xff] }
 0x32b   :  { %v320_v9 = vmul.f32 %v953_v6, %v1211_v37  ;;  %956 = vrcp.f32 %v512_v11 }
 0x330   :  { %v955_v12 = vpop.eup %954 }
 0x331   :  { %v912_v60 = vpop.permute.xlu2 %911  ;;  %v907_v61 = vpop.permute.xlu1 %906  ;;  %v515_v14 = vmul.f32 %v955_v12, %v1216_v41  ;;  %v727_v12 = vld [vmem:[#allocation7 + $0x98] sm:$0xff] }
 0x332   :  { %v908_v63 = vunpack.i.l.bf16 %v907_v61  ;;  %v913_v0 = vunpack.i.l.bf16 %v912_v60  ;;  %v909_v1 = vunpack.i.h.bf16 %v907_v61  ;;  %v914_v2 = vunpack.i.h.bf16 %v912_v60  ;;  %v957_v15 = vpop.eup %956  ;;  %744 = vmatpush.msra.mxu0 %v727_v12 }
 0x333   :  { %v516_v16 = vmul.f32 %v957_v15, %v1218_v42 }
 0x334   :  { %347 = vmatpush.msrb.mxu2 %v908_v63  ;;  %445 = vmatpush.msrb.mxu3 %v913_v0  ;;  %v684_v0 = vld [vmem:[#allocation7 + $0x48] sm:$0xff] }
 0x336   :  { %348 = vmatpush.msrb.mxu2 %v909_v1  ;;  %446 = vmatpush.msrb.mxu3 %v914_v2  ;;  %v683_v2 = vld [vmem:[#allocation7 + $0x40] sm:$0xff] }
 0x337   :  { %851 = vmatmul.msk.f32.vlgmr.msrb.gmra.mxu2 %vm200_vm4, %v319_v3  ;;  %857 = vmatmul.msk.f32.vlgmr.msrb.gmra.mxu3 %vm200_vm4, %v417_v4 }
 0x339   :  { %v917_v5 = vpop.permute.xlu2 %916 }
 0x33a   :  { %v918_v7 = vunpack.i.l.bf16 %v917_v5  ;;  %v919_v8 = vunpack.i.h.bf16 %v917_v5 }
 0x33c   :  { %543 = vmatpush.msra.mxu2 %v918_v7 }
 0x33e   :  { %544 = vmatpush.msra.mxu2 %v919_v8 }
 0x33f   :  { %852 = vmatmul.msk.f32.gmra.mxu2 %vm200_vm4, %v320_v9 }
 0x340   :  { %871 = vmatpush.msrb.mxu2 %v727_v12 }
 0x347   :  { %863 = vmatmul.msk.f32.vlgmr.msra.gmra.mxu2 %vm200_vm4, %v515_v14  ;;  %v726_v14 = vld [vmem:[#allocation7 + $0x90] sm:$0xff] }
 0x348   :  { %745 = vmatpush.msra.mxu0 %v726_v14  ;;  %872 = vmatpush.msrb.mxu2 %v726_v14 }
 0x34f   :  { %864 = vmatmul.msk.f32.gmra.mxu2 %vm200_vm4, %v516_v16 }
 0x35c   :  { %v414_v17 = vpop.xlane.xlu1 %413 }
 0x35d   :  { %958 = vrcp.f32 %v414_v17 }
 0x35e   :  { %960 = vrcp.f32 %v1091_v57  ;;  %v925_v57 = vld [vmem:[#allocation7 + $0xc3] ss:$0 sm:$0xff] }
 0x363   :  { %v959_v18 = vpop.eup %958 }
 0x364   :  { %v418_v19 = vmul.f32 %v959_v18, %v943_v47  ;;  %v961_v55 = vpop.eup %960  ;;  %v725_v18 = vld [vmem:[#allocation7 + $0x88] sm:$0xff] }
 0x365   :  { %v629_v58 = vmul.f32 32.0, %v961_v55  ;;  %vm633_vm7 = vweird.f32 %v961_v55  ;;  %746 = vmatpush.msra.mxu0 %v725_v18  ;;  %873 = vmatpush.msrb.mxu2 %v725_v18 }
 0x366   :  { %858 = vmatmul.msk.f32.gmra.mxu3 %vm200_vm4, %v418_v19 }
 0x367   :  { %v630_v59 = vsub.f32 1.0, %v629_v58 }
 0x369   :  { %v631_v60 = vmul.f32 %v961_v55, %v630_v59 }
 0x36b   :  { %v632_v61 = vadd.f32 %v961_v55, %v631_v60 }
 0x36d   :  { %v1263_v63 = vsel %vm633_vm7, %v961_v55, %v632_v61 }
 0x389   :  { %v252_v20 = vpop.f32.mrf.mxu2 }
 0x3a6   :  { %v255_v21 = vpop.f32.mrf.mxu2 }
 0x3ba   :  { %v350_v22 = vpop.f32.mrf.mxu2  ;;  %v448_v23 = vpop.f32.mrf.mxu3 }
 0x3bb   :  { %562 = vrot.lane.b32.xlu0 %v448_v23, %s1089_s11  ;;  %554 = vrot.lane.b32.xlu2 %v350_v22, %s1074_s21  ;;  %v723_v23 = vld [vmem:[#allocation7 + $0x78] sm:$0xff] }
 0x3c2   :  { %v353_v24 = vpop.f32.mrf.mxu2 }
 0x3c3   :  { %556 = vrot.lane.b32.xlu1 %v353_v24, %s1074_s21 }
 0x3ca   :  { %v546_v26 = vpop.f32.mrf.mxu2 }
 0x3d2   :  { %v549_v27 = vpop.f32.mrf.mxu2 }
 0x3e9   :  { %v451_v25 = vpop.f32.mrf.mxu3 }
 0x3ea   :  { %564 = vrot.lane.b32.xlu2 %v451_v25, %s1089_s11 }
 0x3f2   :  { %570 = vrot.lane.b32.xlu2 %v546_v26, %s1090_s12 }
 0x3fa   :  { %572 = vrot.lane.b32.xlu2 %v549_v27, %s1090_s12 }
 0x415   :  { %v555_v32 = vpop.permute.xlu2 %554 }
 0x416   :  { %v576_v35 = vsel %vm166_vm2, %v252_v20, %v555_v32  ;;  %v724_v20 = vld [vmem:[#allocation7 + $0x80] sm:$0xff] }
 0x417   :  { %747 = vmatpush.msra.mxu0 %v724_v20  ;;  %874 = vmatpush.msrb.mxu2 %v724_v20  ;;  %v922_v32 = vld [vmem:[#allocation7 + $0xc4] ss:$0 sm:$0xff] }
 0x419   :  { %748 = vmatpush.msra.mxu0 %v723_v23  ;;  %875 = vmatpush.msrb.mxu2 %v723_v23 }
 0x42d   :  { %v563_v34 = vpop.permute.xlu0 %562 }
 0x42e   :  { %v578_v36 = vsel %vm200_vm4, %v576_v35, %v563_v34 }
 0x435   :  { %v557_v39 = vpop.permute.xlu1 %556 }
 0x436   :  { %v577_v40 = vsel %vm166_vm2, %v255_v21, %v557_v39 }
 0x444   :  { %v565_v33 = vpop.permute.xlu2 %564 }
 0x445   :  { %v579_v41 = vsel %vm200_vm4, %v577_v40, %v565_v33 }
 0x44c   :  { %v571_v37 = vpop.permute.xlu2 %570 }
 0x44d   :  { %v581_v38 = vsel %vm580_vm6, %v578_v36, %v571_v37  ;;  %v923_v36 = vld [vmem:[#allocation7 + $0xc5] ss:$0 sm:$0xff] }
 0x44e   :  { %865 = vmatmul.msk.f32.vlgmr.msra.gmra.mxu1 %vm117_vm0, %v581_v38 }
 0x454   :  { %v573_v42 = vpop.permute.xlu2 %572 }
 0x455   :  { %v582_v43 = vsel %vm580_vm6, %v579_v41, %v573_v42 }
 0x456   :  { %866 = vmatmul.msk.f32.gmra.mxu1 %vm117_vm0, %v582_v43 }
 0x4cb   :  { %v612_v45 = vpop.f32.mrf.mxu1 }
 0x4cc   :  { %v613_v46 = vadd.f32 %v921_v44, %v612_v45 }
 0x4ce   :  { %v1248_v47 = vadd.f32 %v613_v46, %v1131_v10 }
 0x4d0   :  { %v622_v48 = vsel %vm117_vm0, %v1248_v47, 0.0  ;;  %v637_v49 = vmul.f32 %v1248_v47, %v1248_v47 }
 0x4d1   :  { %623 = vadd.xlane.f32.xlu0 %v622_v48  ;;  %v721_v48 = vld [vmem:[#allocation7 + $0x68] sm:$0xff] }
 0x4d2   :  { %v639_v50 = vsel %vm117_vm0, %v637_v49, 0.0  ;;  %v720_v49 = vld [vmem:[#allocation7 + $0x60] sm:$0xff] }
 0x4d3   :  { %640 = vadd.xlane.f32.xlu2 %v639_v50  ;;  %v615_v51 = vpop.f32.mrf.mxu1  ;;  %v924_v50 = vld [vmem:[#allocation7 + $0xc1] ss:$0 sm:$0xff] }
 0x4d4   :  { %v616_v52 = vadd.f32 %v921_v44, %v615_v51 }
 0x4d6   :  { %v1256_v53 = vadd.f32 %v616_v52, %v1136_v13  ;;  %v686_v13 = vld [vmem:[#allocation7 + $0x58] sm:$0xff] }
 0x4d7   :  { %707 = vmatpush.msra.mxu3 %v686_v13 }
 0x4d8   :  { %v625_v54 = vsel %vm117_vm0, %v1256_v53, 0.0  ;;  %v638_v10 = vmul.f32 %v1256_v53, %v1256_v53 }
 0x4d9   :  { %626 = vadd.xlane.f32.xlu1 %v625_v54  ;;  %708 = vmatpush.msra.mxu3 %v685_v62 }
 0x4da   :  { %v642_v56 = vsel %vm117_vm0, %v638_v10, 0.0 }
 0x4db   :  { %643 = vadd.xlane.f32.xlu0 %v642_v56  ;;  %709 = vmatpush.msra.mxu3 %v684_v0 }
 0x4dd   :  { %710 = vmatpush.msra.mxu3 %v683_v2 }
 0x544   :  { %v624_v1 = vpop.xlane.xlu0 %623 }
 0x545   :  { %v635_v3 = vmul.f32 %v1263_v63, %v624_v1 }
 0x546   :  { %v641_v4 = vpop.xlane.xlu2 %640 }
 0x547   :  { %v647_v5 = vmul.f32 %v635_v3, %v635_v3  ;;  %v645_v6 = vmul.f32 %v641_v4, %v1263_v63  ;;  %v651_v31 = vsub.f32 %v1248_v47, %v635_v3  ;;  %v722_v47 = vld [vmem:[#allocation7 + $0x70] sm:$0xff] }
 0x548   :  { %749 = vmatpush.msra.mxu0 %v722_v47  ;;  %876 = vmatpush.msrb.mxu2 %v722_v47 }
 0x549   :  { %v649_v7 = vsub.f32 %v645_v6, %v647_v5 }
 0x54a   :  { %750 = vmatpush.msra.mxu0 %v721_v48  ;;  %877 = vmatpush.msrb.mxu2 %v721_v48 }
 0x54b   :  { %v653_v8 = vadd.f32 1e-05, %v649_v7 }
 0x54c   :  { %v627_v9 = vpop.xlane.xlu1 %626  ;;  %751 = vmatpush.msra.mxu0 %v720_v49  ;;  %878 = vmatpush.msrb.mxu2 %v720_v49 }
 0x54d   :  { %962 = vrsqrt.f32 %v653_v8  ;;  %v636_v11 = vmul.f32 %v1263_v63, %v627_v9  ;;  %vm661_vm9 = vweird.f32 %v653_v8 }
 0x54e   :  { %v644_v15 = vpop.xlane.xlu0 %643 }
 0x54f   :  { %v648_v16 = vmul.f32 %v636_v11, %v636_v11  ;;  %v646_v17 = vmul.f32 %v644_v15, %v1263_v63  ;;  %v652_v42 = vsub.f32 %v1256_v53, %v636_v11 }
 0x551   :  { %v650_v19 = vsub.f32 %v646_v17, %v648_v16 }
 0x553   :  { %v963_v21 = vpop.eup %962  ;;  %v654_v22 = vadd.f32 1e-05, %v650_v19 }
 0x554   :  { %v656_v24 = vmul.f32 %v963_v21, %v653_v8  ;;  %vm662_vm8 = vweird.f32 %v963_v21 }
 0x555   :  { %964 = vrsqrt.f32 %v654_v22  ;;  %vm663_vm10 = vmor %vm661_vm9, %vm662_vm8  ;;  %vm671_vm12 = vweird.f32 %v654_v22 }
 0x556   :  { %v657_v25 = vmul.f32 %v963_v21, %v656_v24 }
 0x558   :  { %v658_v26 = vmul.f32 0.5, %v657_v25 }
 0x55a   :  { %v659_v27 = vsub.f32 1.5, %v658_v26 }
 0x55b   :  { %v965_v28 = vpop.eup %964 }
 0x55c   :  { %v660_v29 = vmul.f32 %v963_v21, %v659_v27  ;;  %v666_v30 = vmul.f32 %v965_v28, %v654_v22  ;;  %vm672_vm11 = vweird.f32 %v965_v28 }
 0x55d   :  { %vm673_vm13 = vmor %vm671_vm12, %vm672_vm11 }
 0x55e   :  { %v664_v33 = vsel %vm663_vm10, %v963_v21, %v660_v29  ;;  %v667_v34 = vmul.f32 %v965_v28, %v666_v30 }
 0x55f   :  { %v675_v35 = vmul.f32 %v664_v33, %v651_v31  ;;  %v927_v31 = vld [vmem:[#allocation7 + $0xc7] ss:$0 sm:$0xff] }
 0x560   :  { %v668_v37 = vmul.f32 0.5, %v667_v34 }
 0x561   :  { %v678_v38 = vmul.f32 %v922_v32, %v675_v35 }
 0x562   :  { %v669_v39 = vsub.f32 1.5, %v668_v37 }
 0x563   :  { %v681_v40 = vadd.f32 %v923_v36, %v678_v38 }
 0x564   :  { %v670_v41 = vmul.f32 %v965_v28, %v669_v39 }
 0x565   :  { %867 = vmatmul.msk.f32.vlgmr.msra.gmra.mxu3 %vm117_vm0, %v681_v40 }
 0x566   :  { %v674_v43 = vsel %vm673_vm13, %v965_v28, %v670_v41  ;;  %v926_v28 = vld [vmem:[#allocation7 + $0xc6] ss:$0 sm:$0xff] }
 0x567   :  { %v676_v44 = vmul.f32 %v674_v43, %v652_v42 }
 0x569   :  { %v679_v45 = vmul.f32 %v922_v32, %v676_v44 }
 0x56b   :  { %v682_v46 = vadd.f32 %v923_v36, %v679_v45 }
 0x56d   :  { %868 = vmatmul.msk.f32.gmra.mxu3 %vm117_vm0, %v682_v46 }
 0x5e8   :  { %v712_v51 = vpop.f32.mrf.mxu3 }
 0x5e9   :  { %v713_v52 = vadd.f32 %v924_v50, %v712_v51 }
 0x5eb   :  { %v718_v53 = vmax.f32 %v713_v52, 0.0 }
 0x5ed   :  { %869 = vmatmul.msk.f32.vlgmr.msra.gmra.mxu0 %vm130_vm1, %v718_v53 }
 0x5f0   :  { %v715_v54 = vpop.f32.mrf.mxu3 }
 0x5f1   :  { %v716_v10 = vadd.f32 %v924_v50, %v715_v54 }
 0x5f3   :  { %v719_v56 = vmax.f32 %v716_v10, 0.0 }
 0x5f5   :  { %870 = vmatmul.msk.f32.vlgmr.msrb.gmra.mxu2 %vm130_vm1, %v719_v56 }
 0x66a   :  { %v753_v55 = vpop.f32.mrf.mxu0 }
 0x66b   :  { %v754_v58 = vadd.f32 %v925_v57, %v753_v55 }
 0x66d   :  { %v759_v59 = vadd.f32 %v754_v58, %v681_v40 }
 0x66f   :  { %v763_v60 = vsel %vm117_vm0, %v759_v59, 0.0  ;;  %v771_v61 = vmul.f32 %v759_v59, %v759_v59 }
 0x670   :  { %764 = vadd.xlane.f32.xlu2 %v763_v60 }
 0x671   :  { %v773_v13 = vsel %vm117_vm0, %v771_v61, 0.0 }
 0x672   :  { %774 = vadd.xlane.f32.xlu1 %v773_v13 }
 0x678   :  { %v756_v62 = vpop.f32.mrf.mxu2 }
 0x679   :  { %v757_v0 = vadd.f32 %v925_v57, %v756_v62 }
 0x67b   :  { %v760_v1 = vadd.f32 %v757_v0, %v682_v46 }
 0x67d   :  { %v766_v2 = vsel %vm117_vm0, %v760_v1, 0.0  ;;  %v772_v3 = vmul.f32 %v760_v1, %v760_v1 }
 0x67e   :  { %767 = vadd.xlane.f32.xlu0 %v766_v2 }
 0x67f   :  { %v776_v4 = vsel %vm117_vm0, %v772_v3, 0.0 }
 0x680   :  { %777 = vadd.xlane.f32.xlu2 %v776_v4 }
 0x6e3   :  { %v765_v5 = vpop.xlane.xlu2 %764 }
 0x6e4   :  { %v769_v6 = vmul.f32 %v765_v5, %v1263_v63 }
 0x6e5   :  { %v775_v7 = vpop.xlane.xlu1 %774 }
 0x6e6   :  { %v781_v8 = vmul.f32 %v769_v6, %v769_v6  ;;  %v779_v9 = vmul.f32 %v775_v7, %v1263_v63  ;;  %v785_v27 = vsub.f32 %v759_v59, %v769_v6 }
 0x6e8   :  { %v783_v11 = vsub.f32 %v779_v9, %v781_v8 }
 0x6ea   :  { %v787_v12 = vadd.f32 1e-05, %v783_v11 }
 0x6ec   :  { %966 = vrsqrt.f32 %v787_v12  ;;  %vm795_vm15 = vweird.f32 %v787_v12 }
 0x6f1   :  { %v768_v14 = vpop.xlane.xlu0 %767 }
 0x6f2   :  { %v967_v15 = vpop.eup %966  ;;  %v770_v16 = vmul.f32 %v768_v14, %v1263_v63 }
 0x6f3   :  { %v790_v17 = vmul.f32 %v967_v15, %v787_v12  ;;  %v778_v18 = vpop.xlane.xlu2 %777  ;;  %vm796_vm14 = vweird.f32 %v967_v15 }
 0x6f4   :  { %v782_v19 = vmul.f32 %v770_v16, %v770_v16  ;;  %v780_v20 = vmul.f32 %v778_v18, %v1263_v63  ;;  %vm797_vm1 = vmor %vm795_vm15, %vm796_vm14  ;;  %v786_v39 = vsub.f32 %v760_v1, %v770_v16 }
 0x6f5   :  { %v791_v21 = vmul.f32 %v967_v15, %v790_v17 }
 0x6f6   :  { %v784_v22 = vsub.f32 %v780_v20, %v782_v19 }
 0x6f7   :  { %v792_v23 = vmul.f32 0.5, %v791_v21 }
 0x6f8   :  { %v788_v24 = vadd.f32 1e-05, %v784_v22 }
 0x6f9   :  { %v793_v25 = vsub.f32 1.5, %v792_v23 }
 0x6fa   :  { %968 = vrsqrt.f32 %v788_v24  ;;  %vm805_vm3 = vweird.f32 %v788_v24 }
 0x6fb   :  { %v794_v26 = vmul.f32 %v967_v15, %v793_v25 }
 0x6fd   :  { %v798_v29 = vsel %vm797_vm1, %v967_v15, %v794_v26 }
 0x6fe   :  { %v809_v30 = vmul.f32 %v798_v29, %v785_v27 }
 0x700   :  { %v969_v32 = vpop.eup %968  ;;  %v812_v33 = vmul.f32 %v926_v28, %v809_v30 }
 0x701   :  { %v800_v34 = vmul.f32 %v969_v32, %v788_v24  ;;  %vm806_vm2 = vweird.f32 %v969_v32 }
 0x702   :  { %v815_v35 = vadd.f32 %v927_v31, %v812_v33  ;;  %vm807_vm4 = vmor %vm805_vm3, %vm806_vm2 }
 0x703   :  { %v801_v63 = vmul.f32 %v969_v32, %v800_v34 }
 0x704   :  { %817 = vst.msk [vmem:[#allocation8] sm:$0xff] %vm117_vm0, %v815_v35 }
 0x705   :  { %v802_v36 = vmul.f32 0.5, %v801_v63 }
 0x707   :  { %v803_v37 = vsub.f32 1.5, %v802_v36 }
 0x709   :  { %v804_v38 = vmul.f32 %v969_v32, %v803_v37 }
 0x70b   :  { %v808_v40 = vsel %vm807_vm4, %v969_v32, %v804_v38 }
 0x70c   :  { %v810_v41 = vmul.f32 %v808_v40, %v786_v39 }
 0x70e   :  { %v813_v42 = vmul.f32 %v926_v28, %v810_v41 }
 0x710   :  { %v816_v43 = vadd.f32 %v927_v31, %v813_v42 }
 0x712   :  { %818 = vst.msk [vmem:[#allocation8 + $0x8] sm:$0xff] %vm117_vm0, %v816_v43 }
 0x713   :  { %831 = dma.vmem_to_hbm [thread:$0]  %s824_s14, 256, %s826_s17, [#allocation4], %s1073_s20, %s1073_s20, %s1074_s21  }
 0x714   :  { %1070 = dma.done.wait [#allocation4], 256  }
 0x715   :  { %1071 = vsyncadd [#allocation4], 4294967040 }
 0x716   :  { %836 = vsyncpa [#allocation3], 1 }
 0x717   :  { %837 = vsyncpa [#allocation6], 1 }
 0x718   :  { %838 = vsyncpa [#allocation4], 1 }

</bundles_post_ra>
